<compile_context>
chip_gen: v6e
topology: v6e:2x2x1
jax: 0.10.0
libtpu: 0.0.40
codegen_flags: <defaults>
</compile_context>

<pallas_src>
import jax
import jax.numpy as jnp
from jax.experimental import pallas as pl
from jax.experimental.pallas import tpu as pltpu


def _embedding_gather_kernel(ids_ref, emb_hbm, pos_ref, out_ref, rows_vmem, sems):
    """One grid step handles one (batch row, sequence tile) of ts tokens.

    ids_ref   : SMEM (B, S_pad) int32   all token ids (scalar-prefetched)
    emb_hbm   : HBM  (V, D)     float32 full embedding table (no auto-DMA)
    pos_ref   : VMEM (ts, D)    float32 positional rows for this tile
    out_ref   : VMEM (ts, D)    float32 output tile (of flattened (B*S_pad, D))
    rows_vmem : VMEM (ts, D)    float32 gather landing buffer (scratch)
    sems      : DMA semaphores, one per in-flight row copy
    """
    b = pl.program_id(0)
    st = pl.program_id(1)
    ts = rows_vmem.shape[0]
    base = st * ts

    # Issue all row-gather DMAs (HBM -> VMEM), one per token in the tile, then
    # wait for all of them.  Token ids come from SMEM (scalar prefetch).
    copies = []
    for i in range(ts):  # static unroll; ts is modest by construction
        row = ids_ref[b, base + i]
        cp = pltpu.make_async_copy(
            emb_hbm.at[pl.ds(row, 1)],      # (1, D) row of the table in HBM
            rows_vmem.at[pl.ds(i, 1)],      # (1, D) slot in the VMEM buffer
            sems.at[i],
        )
        cp.start()
        copies.append(cp)
    for cp in copies:
        cp.wait()

    # VPU add of the positional rows; one vectorized store of the tile.
    out_ref[...] = (rows_vmem[...] + pos_ref[...]).astype(out_ref.dtype)


def make_positional_table(max_seq_len: int, embedding_dim: int) -> jnp.ndarray:
    """Same formula as the PyTorch __init__ (sin on even dims, cos on odd)."""
    pos_units = jnp.asarray(
        [10000.0 ** (2 * i / embedding_dim) for i in range(embedding_dim // 2)],
        dtype=jnp.float32,
    )                                                         # (D/2,)
    p = jnp.arange(max_seq_len, dtype=jnp.float32)[:, None]   # (L, 1)
    angles = p / pos_units[None, :]                           # (L, D/2)
    pos = jnp.zeros((max_seq_len, embedding_dim), dtype=jnp.float32)
    pos = pos.at[:, 0::2].set(jnp.sin(angles))
    pos = pos.at[:, 1::2].set(jnp.cos(angles))
    return pos


def embedding_block_forward(x, emb_weight, pos_table, *, ts=256):
    """x: (B, S) int; emb_weight: (V, D) f32; pos_table: (max_len, D) f32.

    Returns (B, S, D) f32: emb_weight[x] + pos_table[:S] broadcast over batch.
    """
    B, S = x.shape
    V, D = emb_weight.shape

    # Sequence tile: multiple of 8, capped at the 8-aligned sequence length.
    s_aligned = ((S + 7) // 8) * 8
    ts = max(8, min((ts // 8) * 8, s_aligned))
    n_st = pl.cdiv(S, ts)
    S_pad = n_st * ts

    ids = x.astype(jnp.int32)                    # (B, S) -> SMEM via prefetch
    pos = pos_table[:S, :].astype(jnp.float32)   # (S, D), read directly
    if S_pad != S:
        ids = jnp.pad(ids, ((0, 0), (0, S_pad - S)))       # pad tokens -> row 0
        pos = jnp.pad(pos, ((0, S_pad - S), (0, 0)))

    out_flat = pl.pallas_call(
        _embedding_gather_kernel,
        out_shape=jax.ShapeDtypeStruct((B * S_pad, D), jnp.float32),
        grid_spec=pltpu.PrefetchScalarGridSpec(
            num_scalar_prefetch=1,               # ids -> SMEM, fed to index_maps too
            grid=(B, n_st),
            in_specs=[
                pl.BlockSpec(memory_space=pl.ANY),                      # emb table stays in HBM
                pl.BlockSpec((ts, D), lambda b, st, ids_smem: (st, 0)),  # pos tile
            ],
            out_specs=pl.BlockSpec(
                (ts, D), lambda b, st, ids_smem: (b * n_st + st, 0)),
            scratch_shapes=[
                pltpu.VMEM((ts, D), jnp.float32),        # gathered rows
                pltpu.SemaphoreType.DMA((ts,)),          # one sem per row copy
            ],
        ),
        compiler_params=pltpu.CompilerParams(
            dimension_semantics=("parallel", "parallel"),
            vmem_limit_bytes=32 * 1024 * 1024,
        ),
    )(ids, emb_weight.astype(jnp.float32), pos)

    return out_flat.reshape(B, S_pad, D)[:, :S, :]


if __name__ == "__main__":
    # Small shapes consistent with the module's forward:
    #   x : (batch=2, num_words=8) int token ids in [0, num_embeddings)
    num_embeddings = 64
    embedding_dim = 32
    max_seq_len = 512
    B, S = 2, 8

    key = jax.random.PRNGKey(0)
    k_idx, k_emb = jax.random.split(key)

    # Deterministic parameter init (nn.Embedding default is N(0, 1)).
    emb_weight = jax.random.normal(
        k_emb, (num_embeddings, embedding_dim), dtype=jnp.float32
    )
    pos_table = make_positional_table(max_seq_len, embedding_dim)

    x = jax.random.randint(k_idx, (B, S), 0, num_embeddings, dtype=jnp.int32)

    out = embedding_block_forward(x, emb_weight, pos_table)
    out = jax.block_until_ready(out)

    # Pure-JAX reference: embedding lookup + positional add.
    ref = emb_weight[x] + pos_table[:S, :][None, :, :]
    assert out.shape == (B, S, embedding_dim)
    assert jnp.allclose(out, ref, atol=1e-5, rtol=1e-5), "mismatch vs reference"

    print("KERNEL_OK")
</pallas_src>

<mosaic_0001>
module attributes {stable_mosaic.version = 11 : i64} {
  func.func @_embedding_gather_kernel(%arg0: i32, %arg1: i32, %arg2: memref<2x8xi32, #tpu.memory_space<smem>>, %arg3: memref<64x32xf32, #tpu.memory_space<any>>, %arg4: memref<8x32xf32, #tpu.memory_space<vmem>>, %arg5: memref<8x32xf32, #tpu.memory_space<vmem>>, %arg6: memref<8x32xf32, #tpu.memory_space<vmem>>, %arg7: memref<8x!tpu.dma_semaphore, #tpu.memory_space<semaphore_mem>>) attributes {dimension_semantics = [#tpu.dimension_semantics<parallel>, #tpu.dimension_semantics<parallel>], iteration_bounds = array<i64: 2, 1>, scalar_prefetch = 1 : i64, scratch_operands = 2 : i64, tpu.core_type = #tpu.core_type<tc>, window_params = [{}, {transform_indices = @transform_1, window_bounds = array<i64: 8, 32>}, {transform_indices = @transform_2, window_bounds = array<i64: 8, 32>}]} {
    %c8_i32 = arith.constant 8 : i32
    %0 = arith.muli %arg1, %c8_i32 : i32
    %c0_i32 = arith.constant 0 : i32
    %1 = arith.addi %0, %c0_i32 : i32
    %2 = arith.index_cast %arg0 : i32 to index
    %3 = arith.index_cast %1 : i32 to index
    %4 = memref.load %arg2[%2, %3] : memref<2x8xi32, #tpu.memory_space<smem>>
    %c0_i32_0 = arith.constant 0 : i32
    %c0_i32_1 = arith.constant 0 : i32
    %5 = tpu.memref_slice %arg3[%4, %c0_i32_1] : memref<64x32xf32, #tpu.memory_space<any>> -> memref<1x32xf32, #tpu.memory_space<any>>
    %c0_i32_2 = arith.constant 0 : i32
    %c0_i32_3 = arith.constant 0 : i32
    %6 = tpu.memref_slice %arg6[%c0_i32_2, %c0_i32_3] : memref<8x32xf32, #tpu.memory_space<vmem>> -> memref<1x32xf32, #tpu.memory_space<vmem>>
    %7 = tpu.memref_slice %arg7[%c0_i32_0] : memref<8x!tpu.dma_semaphore, #tpu.memory_space<semaphore_mem>> -> memref<1x!tpu.dma_semaphore, #tpu.memory_space<semaphore_mem>>
    %8 = tpu.memref_squeeze %7 : memref<1x!tpu.dma_semaphore, #tpu.memory_space<semaphore_mem>> -> memref<!tpu.dma_semaphore, #tpu.memory_space<semaphore_mem>>
    tpu.enqueue_dma source(%5 : memref<1x32xf32, #tpu.memory_space<any>>) target(%6 : memref<1x32xf32, #tpu.memory_space<vmem>>) target_semaphore(%8 : memref<!tpu.dma_semaphore, #tpu.memory_space<semaphore_mem>>)
    %c1_i32 = arith.constant 1 : i32
    %9 = arith.addi %0, %c1_i32 : i32
    %10 = arith.index_cast %arg0 : i32 to index
    %11 = arith.index_cast %9 : i32 to index
    %12 = memref.load %arg2[%10, %11] : memref<2x8xi32, #tpu.memory_space<smem>>
    %c1_i32_4 = arith.constant 1 : i32
    %c0_i32_5 = arith.constant 0 : i32
    %13 = tpu.memref_slice %arg3[%12, %c0_i32_5] : memref<64x32xf32, #tpu.memory_space<any>> -> memref<1x32xf32, #tpu.memory_space<any>>
    %c1_i32_6 = arith.constant 1 : i32
    %c0_i32_7 = arith.constant 0 : i32
    %14 = tpu.memref_slice %arg6[%c1_i32_6, %c0_i32_7] : memref<8x32xf32, #tpu.memory_space<vmem>> -> memref<1x32xf32, #tpu.memory_space<vmem>>
    %15 = tpu.memref_slice %arg7[%c1_i32_4] : memref<8x!tpu.dma_semaphore, #tpu.memory_space<semaphore_mem>> -> memref<1x!tpu.dma_semaphore, #tpu.memory_space<semaphore_mem>>
    %16 = tpu.memref_squeeze %15 : memref<1x!tpu.dma_semaphore, #tpu.memory_space<semaphore_mem>> -> memref<!tpu.dma_semaphore, #tpu.memory_space<semaphore_mem>>
    tpu.enqueue_dma source(%13 : memref<1x32xf32, #tpu.memory_space<any>>) target(%14 : memref<1x32xf32, #tpu.memory_space<vmem>>) target_semaphore(%16 : memref<!tpu.dma_semaphore, #tpu.memory_space<semaphore_mem>>)
    %c2_i32 = arith.constant 2 : i32
    %17 = arith.addi %0, %c2_i32 : i32
    %18 = arith.index_cast %arg0 : i32 to index
    %19 = arith.index_cast %17 : i32 to index
    %20 = memref.load %arg2[%18, %19] : memref<2x8xi32, #tpu.memory_space<smem>>
    %c2_i32_8 = arith.constant 2 : i32
    %c0_i32_9 = arith.constant 0 : i32
    %21 = tpu.memref_slice %arg3[%20, %c0_i32_9] : memref<64x32xf32, #tpu.memory_space<any>> -> memref<1x32xf32, #tpu.memory_space<any>>
    %c2_i32_10 = arith.constant 2 : i32
    %c0_i32_11 = arith.constant 0 : i32
    %22 = tpu.memref_slice %arg6[%c2_i32_10, %c0_i32_11] : memref<8x32xf32, #tpu.memory_space<vmem>> -> memref<1x32xf32, #tpu.memory_space<vmem>>
    %23 = tpu.memref_slice %arg7[%c2_i32_8] : memref<8x!tpu.dma_semaphore, #tpu.memory_space<semaphore_mem>> -> memref<1x!tpu.dma_semaphore, #tpu.memory_space<semaphore_mem>>
    %24 = tpu.memref_squeeze %23 : memref<1x!tpu.dma_semaphore, #tpu.memory_space<semaphore_mem>> -> memref<!tpu.dma_semaphore, #tpu.memory_space<semaphore_mem>>
    tpu.enqueue_dma source(%21 : memref<1x32xf32, #tpu.memory_space<any>>) target(%22 : memref<1x32xf32, #tpu.memory_space<vmem>>) target_semaphore(%24 : memref<!tpu.dma_semaphore, #tpu.memory_space<semaphore_mem>>)
    %c3_i32 = arith.constant 3 : i32
    %25 = arith.addi %0, %c3_i32 : i32
    %26 = arith.index_cast %arg0 : i32 to index
    %27 = arith.index_cast %25 : i32 to index
    %28 = memref.load %arg2[%26, %27] : memref<2x8xi32, #tpu.memory_space<smem>>
    %c3_i32_12 = arith.constant 3 : i32
    %c0_i32_13 = arith.constant 0 : i32
    %29 = tpu.memref_slice %arg3[%28, %c0_i32_13] : memref<64x32xf32, #tpu.memory_space<any>> -> memref<1x32xf32, #tpu.memory_space<any>>
    %c3_i32_14 = arith.constant 3 : i32
    %c0_i32_15 = arith.constant 0 : i32
    %30 = tpu.memref_slice %arg6[%c3_i32_14, %c0_i32_15] : memref<8x32xf32, #tpu.memory_space<vmem>> -> memref<1x32xf32, #tpu.memory_space<vmem>>
    %31 = tpu.memref_slice %arg7[%c3_i32_12] : memref<8x!tpu.dma_semaphore, #tpu.memory_space<semaphore_mem>> -> memref<1x!tpu.dma_semaphore, #tpu.memory_space<semaphore_mem>>
    %32 = tpu.memref_squeeze %31 : memref<1x!tpu.dma_semaphore, #tpu.memory_space<semaphore_mem>> -> memref<!tpu.dma_semaphore, #tpu.memory_space<semaphore_mem>>
    tpu.enqueue_dma source(%29 : memref<1x32xf32, #tpu.memory_space<any>>) target(%30 : memref<1x32xf32, #tpu.memory_space<vmem>>) target_semaphore(%32 : memref<!tpu.dma_semaphore, #tpu.memory_space<semaphore_mem>>)
    %c4_i32 = arith.constant 4 : i32
    %33 = arith.addi %0, %c4_i32 : i32
    %34 = arith.index_cast %arg0 : i32 to index
    %35 = arith.index_cast %33 : i32 to index
    %36 = memref.load %arg2[%34, %35] : memref<2x8xi32, #tpu.memory_space<smem>>
    %c4_i32_16 = arith.constant 4 : i32
    %c0_i32_17 = arith.constant 0 : i32
    %37 = tpu.memref_slice %arg3[%36, %c0_i32_17] : memref<64x32xf32, #tpu.memory_space<any>> -> memref<1x32xf32, #tpu.memory_space<any>>
    %c4_i32_18 = arith.constant 4 : i32
    %c0_i32_19 = arith.constant 0 : i32
    %38 = tpu.memref_slice %arg6[%c4_i32_18, %c0_i32_19] : memref<8x32xf32, #tpu.memory_space<vmem>> -> memref<1x32xf32, #tpu.memory_space<vmem>>
    %39 = tpu.memref_slice %arg7[%c4_i32_16] : memref<8x!tpu.dma_semaphore, #tpu.memory_space<semaphore_mem>> -> memref<1x!tpu.dma_semaphore, #tpu.memory_space<semaphore_mem>>
    %40 = tpu.memref_squeeze %39 : memref<1x!tpu.dma_semaphore, #tpu.memory_space<semaphore_mem>> -> memref<!tpu.dma_semaphore, #tpu.memory_space<semaphore_mem>>
    tpu.enqueue_dma source(%37 : memref<1x32xf32, #tpu.memory_space<any>>) target(%38 : memref<1x32xf32, #tpu.memory_space<vmem>>) target_semaphore(%40 : memref<!tpu.dma_semaphore, #tpu.memory_space<semaphore_mem>>)
    %c5_i32 = arith.constant 5 : i32
    %41 = arith.addi %0, %c5_i32 : i32
    %42 = arith.index_cast %arg0 : i32 to index
    %43 = arith.index_cast %41 : i32 to index
    %44 = memref.load %arg2[%42, %43] : memref<2x8xi32, #tpu.memory_space<smem>>
    %c5_i32_20 = arith.constant 5 : i32
    %c0_i32_21 = arith.constant 0 : i32
    %45 = tpu.memref_slice %arg3[%44, %c0_i32_21] : memref<64x32xf32, #tpu.memory_space<any>> -> memref<1x32xf32, #tpu.memory_space<any>>
    %c5_i32_22 = arith.constant 5 : i32
    %c0_i32_23 = arith.constant 0 : i32
    %46 = tpu.memref_slice %arg6[%c5_i32_22, %c0_i32_23] : memref<8x32xf32, #tpu.memory_space<vmem>> -> memref<1x32xf32, #tpu.memory_space<vmem>>
    %47 = tpu.memref_slice %arg7[%c5_i32_20] : memref<8x!tpu.dma_semaphore, #tpu.memory_space<semaphore_mem>> -> memref<1x!tpu.dma_semaphore, #tpu.memory_space<semaphore_mem>>
    %48 = tpu.memref_squeeze %47 : memref<1x!tpu.dma_semaphore, #tpu.memory_space<semaphore_mem>> -> memref<!tpu.dma_semaphore, #tpu.memory_space<semaphore_mem>>
    tpu.enqueue_dma source(%45 : memref<1x32xf32, #tpu.memory_space<any>>) target(%46 : memref<1x32xf32, #tpu.memory_space<vmem>>) target_semaphore(%48 : memref<!tpu.dma_semaphore, #tpu.memory_space<semaphore_mem>>)
    %c6_i32 = arith.constant 6 : i32
    %49 = arith.addi %0, %c6_i32 : i32
    %50 = arith.index_cast %arg0 : i32 to index
    %51 = arith.index_cast %49 : i32 to index
    %52 = memref.load %arg2[%50, %51] : memref<2x8xi32, #tpu.memory_space<smem>>
    %c6_i32_24 = arith.constant 6 : i32
    %c0_i32_25 = arith.constant 0 : i32
    %53 = tpu.memref_slice %arg3[%52, %c0_i32_25] : memref<64x32xf32, #tpu.memory_space<any>> -> memref<1x32xf32, #tpu.memory_space<any>>
    %c6_i32_26 = arith.constant 6 : i32
    %c0_i32_27 = arith.constant 0 : i32
    %54 = tpu.memref_slice %arg6[%c6_i32_26, %c0_i32_27] : memref<8x32xf32, #tpu.memory_space<vmem>> -> memref<1x32xf32, #tpu.memory_space<vmem>>
    %55 = tpu.memref_slice %arg7[%c6_i32_24] : memref<8x!tpu.dma_semaphore, #tpu.memory_space<semaphore_mem>> -> memref<1x!tpu.dma_semaphore, #tpu.memory_space<semaphore_mem>>
    %56 = tpu.memref_squeeze %55 : memref<1x!tpu.dma_semaphore, #tpu.memory_space<semaphore_mem>> -> memref<!tpu.dma_semaphore, #tpu.memory_space<semaphore_mem>>
    tpu.enqueue_dma source(%53 : memref<1x32xf32, #tpu.memory_space<any>>) target(%54 : memref<1x32xf32, #tpu.memory_space<vmem>>) target_semaphore(%56 : memref<!tpu.dma_semaphore, #tpu.memory_space<semaphore_mem>>)
    %c7_i32 = arith.constant 7 : i32
    %57 = arith.addi %0, %c7_i32 : i32
    %58 = arith.index_cast %arg0 : i32 to index
    %59 = arith.index_cast %57 : i32 to index
    %60 = memref.load %arg2[%58, %59] : memref<2x8xi32, #tpu.memory_space<smem>>
    %c7_i32_28 = arith.constant 7 : i32
    %c0_i32_29 = arith.constant 0 : i32
    %61 = tpu.memref_slice %arg3[%60, %c0_i32_29] : memref<64x32xf32, #tpu.memory_space<any>> -> memref<1x32xf32, #tpu.memory_space<any>>
    %c7_i32_30 = arith.constant 7 : i32
    %c0_i32_31 = arith.constant 0 : i32
    %62 = tpu.memref_slice %arg6[%c7_i32_30, %c0_i32_31] : memref<8x32xf32, #tpu.memory_space<vmem>> -> memref<1x32xf32, #tpu.memory_space<vmem>>
    %63 = tpu.memref_slice %arg7[%c7_i32_28] : memref<8x!tpu.dma_semaphore, #tpu.memory_space<semaphore_mem>> -> memref<1x!tpu.dma_semaphore, #tpu.memory_space<semaphore_mem>>
    %64 = tpu.memref_squeeze %63 : memref<1x!tpu.dma_semaphore, #tpu.memory_space<semaphore_mem>> -> memref<!tpu.dma_semaphore, #tpu.memory_space<semaphore_mem>>
    tpu.enqueue_dma source(%61 : memref<1x32xf32, #tpu.memory_space<any>>) target(%62 : memref<1x32xf32, #tpu.memory_space<vmem>>) target_semaphore(%64 : memref<!tpu.dma_semaphore, #tpu.memory_space<semaphore_mem>>)
    %c0_i32_32 = arith.constant 0 : i32
    %c0_i32_33 = arith.constant 0 : i32
    %65 = tpu.memref_slice %arg3[%4, %c0_i32_33] : memref<64x32xf32, #tpu.memory_space<any>> -> memref<1x32xf32, #tpu.memory_space<any>>
    %c0_i32_34 = arith.constant 0 : i32
    %c0_i32_35 = arith.constant 0 : i32
    %66 = tpu.memref_slice %arg6[%c0_i32_34, %c0_i32_35] : memref<8x32xf32, #tpu.memory_space<vmem>> -> memref<1x32xf32, #tpu.memory_space<vmem>>
    %67 = tpu.memref_slice %arg7[%c0_i32_32] : memref<8x!tpu.dma_semaphore, #tpu.memory_space<semaphore_mem>> -> memref<1x!tpu.dma_semaphore, #tpu.memory_space<semaphore_mem>>
    %68 = tpu.memref_squeeze %67 : memref<1x!tpu.dma_semaphore, #tpu.memory_space<semaphore_mem>> -> memref<!tpu.dma_semaphore, #tpu.memory_space<semaphore_mem>>
    tpu.wait_dma2 semaphore(%68 : memref<!tpu.dma_semaphore, #tpu.memory_space<semaphore_mem>>) src(%65 : memref<1x32xf32, #tpu.memory_space<any>>) dst(%66 : memref<1x32xf32, #tpu.memory_space<vmem>>)
    %c1_i32_36 = arith.constant 1 : i32
    %c0_i32_37 = arith.constant 0 : i32
    %69 = tpu.memref_slice %arg3[%12, %c0_i32_37] : memref<64x32xf32, #tpu.memory_space<any>> -> memref<1x32xf32, #tpu.memory_space<any>>
    %c1_i32_38 = arith.constant 1 : i32
    %c0_i32_39 = arith.constant 0 : i32
    %70 = tpu.memref_slice %arg6[%c1_i32_38, %c0_i32_39] : memref<8x32xf32, #tpu.memory_space<vmem>> -> memref<1x32xf32, #tpu.memory_space<vmem>>
    %71 = tpu.memref_slice %arg7[%c1_i32_36] : memref<8x!tpu.dma_semaphore, #tpu.memory_space<semaphore_mem>> -> memref<1x!tpu.dma_semaphore, #tpu.memory_space<semaphore_mem>>
    %72 = tpu.memref_squeeze %71 : memref<1x!tpu.dma_semaphore, #tpu.memory_space<semaphore_mem>> -> memref<!tpu.dma_semaphore, #tpu.memory_space<semaphore_mem>>
    tpu.wait_dma2 semaphore(%72 : memref<!tpu.dma_semaphore, #tpu.memory_space<semaphore_mem>>) src(%69 : memref<1x32xf32, #tpu.memory_space<any>>) dst(%70 : memref<1x32xf32, #tpu.memory_space<vmem>>)
    %c2_i32_40 = arith.constant 2 : i32
    %c0_i32_41 = arith.constant 0 : i32
    %73 = tpu.memref_slice %arg3[%20, %c0_i32_41] : memref<64x32xf32, #tpu.memory_space<any>> -> memref<1x32xf32, #tpu.memory_space<any>>
    %c2_i32_42 = arith.constant 2 : i32
    %c0_i32_43 = arith.constant 0 : i32
    %74 = tpu.memref_slice %arg6[%c2_i32_42, %c0_i32_43] : memref<8x32xf32, #tpu.memory_space<vmem>> -> memref<1x32xf32, #tpu.memory_space<vmem>>
    %75 = tpu.memref_slice %arg7[%c2_i32_40] : memref<8x!tpu.dma_semaphore, #tpu.memory_space<semaphore_mem>> -> memref<1x!tpu.dma_semaphore, #tpu.memory_space<semaphore_mem>>
    %76 = tpu.memref_squeeze %75 : memref<1x!tpu.dma_semaphore, #tpu.memory_space<semaphore_mem>> -> memref<!tpu.dma_semaphore, #tpu.memory_space<semaphore_mem>>
    tpu.wait_dma2 semaphore(%76 : memref<!tpu.dma_semaphore, #tpu.memory_space<semaphore_mem>>) src(%73 : memref<1x32xf32, #tpu.memory_space<any>>) dst(%74 : memref<1x32xf32, #tpu.memory_space<vmem>>)
    %c3_i32_44 = arith.constant 3 : i32
    %c0_i32_45 = arith.constant 0 : i32
    %77 = tpu.memref_slice %arg3[%28, %c0_i32_45] : memref<64x32xf32, #tpu.memory_space<any>> -> memref<1x32xf32, #tpu.memory_space<any>>
    %c3_i32_46 = arith.constant 3 : i32
    %c0_i32_47 = arith.constant 0 : i32
    %78 = tpu.memref_slice %arg6[%c3_i32_46, %c0_i32_47] : memref<8x32xf32, #tpu.memory_space<vmem>> -> memref<1x32xf32, #tpu.memory_space<vmem>>
    %79 = tpu.memref_slice %arg7[%c3_i32_44] : memref<8x!tpu.dma_semaphore, #tpu.memory_space<semaphore_mem>> -> memref<1x!tpu.dma_semaphore, #tpu.memory_space<semaphore_mem>>
    %80 = tpu.memref_squeeze %79 : memref<1x!tpu.dma_semaphore, #tpu.memory_space<semaphore_mem>> -> memref<!tpu.dma_semaphore, #tpu.memory_space<semaphore_mem>>
    tpu.wait_dma2 semaphore(%80 : memref<!tpu.dma_semaphore, #tpu.memory_space<semaphore_mem>>) src(%77 : memref<1x32xf32, #tpu.memory_space<any>>) dst(%78 : memref<1x32xf32, #tpu.memory_space<vmem>>)
    %c4_i32_48 = arith.constant 4 : i32
    %c0_i32_49 = arith.constant 0 : i32
    %81 = tpu.memref_slice %arg3[%36, %c0_i32_49] : memref<64x32xf32, #tpu.memory_space<any>> -> memref<1x32xf32, #tpu.memory_space<any>>
    %c4_i32_50 = arith.constant 4 : i32
    %c0_i32_51 = arith.constant 0 : i32
    %82 = tpu.memref_slice %arg6[%c4_i32_50, %c0_i32_51] : memref<8x32xf32, #tpu.memory_space<vmem>> -> memref<1x32xf32, #tpu.memory_space<vmem>>
    %83 = tpu.memref_slice %arg7[%c4_i32_48] : memref<8x!tpu.dma_semaphore, #tpu.memory_space<semaphore_mem>> -> memref<1x!tpu.dma_semaphore, #tpu.memory_space<semaphore_mem>>
    %84 = tpu.memref_squeeze %83 : memref<1x!tpu.dma_semaphore, #tpu.memory_space<semaphore_mem>> -> memref<!tpu.dma_semaphore, #tpu.memory_space<semaphore_mem>>
    tpu.wait_dma2 semaphore(%84 : memref<!tpu.dma_semaphore, #tpu.memory_space<semaphore_mem>>) src(%81 : memref<1x32xf32, #tpu.memory_space<any>>) dst(%82 : memref<1x32xf32, #tpu.memory_space<vmem>>)
    %c5_i32_52 = arith.constant 5 : i32
    %c0_i32_53 = arith.constant 0 : i32
    %85 = tpu.memref_slice %arg3[%44, %c0_i32_53] : memref<64x32xf32, #tpu.memory_space<any>> -> memref<1x32xf32, #tpu.memory_space<any>>
    %c5_i32_54 = arith.constant 5 : i32
    %c0_i32_55 = arith.constant 0 : i32
    %86 = tpu.memref_slice %arg6[%c5_i32_54, %c0_i32_55] : memref<8x32xf32, #tpu.memory_space<vmem>> -> memref<1x32xf32, #tpu.memory_space<vmem>>
    %87 = tpu.memref_slice %arg7[%c5_i32_52] : memref<8x!tpu.dma_semaphore, #tpu.memory_space<semaphore_mem>> -> memref<1x!tpu.dma_semaphore, #tpu.memory_space<semaphore_mem>>
    %88 = tpu.memref_squeeze %87 : memref<1x!tpu.dma_semaphore, #tpu.memory_space<semaphore_mem>> -> memref<!tpu.dma_semaphore, #tpu.memory_space<semaphore_mem>>
    tpu.wait_dma2 semaphore(%88 : memref<!tpu.dma_semaphore, #tpu.memory_space<semaphore_mem>>) src(%85 : memref<1x32xf32, #tpu.memory_space<any>>) dst(%86 : memref<1x32xf32, #tpu.memory_space<vmem>>)
    %c6_i32_56 = arith.constant 6 : i32
    %c0_i32_57 = arith.constant 0 : i32
    %89 = tpu.memref_slice %arg3[%52, %c0_i32_57] : memref<64x32xf32, #tpu.memory_space<any>> -> memref<1x32xf32, #tpu.memory_space<any>>
    %c6_i32_58 = arith.constant 6 : i32
    %c0_i32_59 = arith.constant 0 : i32
    %90 = tpu.memref_slice %arg6[%c6_i32_58, %c0_i32_59] : memref<8x32xf32, #tpu.memory_space<vmem>> -> memref<1x32xf32, #tpu.memory_space<vmem>>
    %91 = tpu.memref_slice %arg7[%c6_i32_56] : memref<8x!tpu.dma_semaphore, #tpu.memory_space<semaphore_mem>> -> memref<1x!tpu.dma_semaphore, #tpu.memory_space<semaphore_mem>>
    %92 = tpu.memref_squeeze %91 : memref<1x!tpu.dma_semaphore, #tpu.memory_space<semaphore_mem>> -> memref<!tpu.dma_semaphore, #tpu.memory_space<semaphore_mem>>
    tpu.wait_dma2 semaphore(%92 : memref<!tpu.dma_semaphore, #tpu.memory_space<semaphore_mem>>) src(%89 : memref<1x32xf32, #tpu.memory_space<any>>) dst(%90 : memref<1x32xf32, #tpu.memory_space<vmem>>)
    %c7_i32_60 = arith.constant 7 : i32
    %c0_i32_61 = arith.constant 0 : i32
    %93 = tpu.memref_slice %arg3[%60, %c0_i32_61] : memref<64x32xf32, #tpu.memory_space<any>> -> memref<1x32xf32, #tpu.memory_space<any>>
    %c7_i32_62 = arith.constant 7 : i32
    %c0_i32_63 = arith.constant 0 : i32
    %94 = tpu.memref_slice %arg6[%c7_i32_62, %c0_i32_63] : memref<8x32xf32, #tpu.memory_space<vmem>> -> memref<1x32xf32, #tpu.memory_space<vmem>>
    %95 = tpu.memref_slice %arg7[%c7_i32_60] : memref<8x!tpu.dma_semaphore, #tpu.memory_space<semaphore_mem>> -> memref<1x!tpu.dma_semaphore, #tpu.memory_space<semaphore_mem>>
    %96 = tpu.memref_squeeze %95 : memref<1x!tpu.dma_semaphore, #tpu.memory_space<semaphore_mem>> -> memref<!tpu.dma_semaphore, #tpu.memory_space<semaphore_mem>>
    tpu.wait_dma2 semaphore(%96 : memref<!tpu.dma_semaphore, #tpu.memory_space<semaphore_mem>>) src(%93 : memref<1x32xf32, #tpu.memory_space<any>>) dst(%94 : memref<1x32xf32, #tpu.memory_space<vmem>>)
    %c0 = arith.constant 0 : index
    %c0_64 = arith.constant 0 : index
    %97 = vector.load %arg6[%c0, %c0_64] : memref<8x32xf32, #tpu.memory_space<vmem>>, vector<8x32xf32>
    %c0_65 = arith.constant 0 : index
    %c0_66 = arith.constant 0 : index
    %98 = vector.load %arg4[%c0_65, %c0_66] : memref<8x32xf32, #tpu.memory_space<vmem>>, vector<8x32xf32>
    %99 = arith.addf %97, %98 : vector<8x32xf32>
    %c0_67 = arith.constant 0 : index
    %c0_68 = arith.constant 0 : index
    %100 = vector.load %arg5[%c0_67, %c0_68] : memref<8x32xf32, #tpu.memory_space<vmem>>, vector<8x32xf32>
    tpu.vector_store %arg5[%c0_67, %c0_68], %99 {strides = array<i32>} : memref<8x32xf32, #tpu.memory_space<vmem>>, vector<8x32xf32>,
    return
  }
  func.func @transform_1(%arg0: i32, %arg1: i32, %arg2: memref<2x8xi32, #tpu.memory_space<smem>>) -> (i32, i32) {
    %c0_i32 = arith.constant 0 : i32
    %c0_i32_0 = arith.constant 0 : i32
    return %arg1, %c0_i32 : i32, i32
  }
  func.func @transform_2(%arg0: i32, %arg1: i32, %arg2: memref<2x8xi32, #tpu.memory_space<smem>>) -> (i32, i32) {
    %c1_i32 = arith.constant 1 : i32
    %0 = arith.muli %arg0, %c1_i32 : i32
    %1 = arith.addi %0, %arg1 : i32
    %c0_i32 = arith.constant 0 : i32
    %c0_i32_0 = arith.constant 0 : i32
    return %1, %c0_i32 : i32, i32
  }
}

</mosaic_0001>

<bundles_post_ra>
// kernel: tpu_custom_call.1
= control target key start
LH: loop header
LB: loop body
LE: loop exit
PB: predicated region body
PF: predicated region fallthrough
CT: control target
= control target key end

     0   :  { %s1210_s0 = inlined_call_operand.vmem [shape: s32[2,8], index: 0, kind: input, shape index: {}]   ;;  %s1211_s1 = inlined_call_operand.vmem [shape: f32[64,32], index: 1, kind: input, shape index: {}]   ;;  %s1212_s2 = inlined_call_operand.vmem [shape: f32[8,32], index: 2, kind: input, shape index: {}]   ;;  %s1213_s3 = inlined_call_operand.hbm [shape: f32[16,32], index: 3, kind: output, shape index: {}]  }
   0x1   :  { %s8_s14 = sshll.u32 %s1210_s0, 4  ;;  %s9_s14 = int_to_ptr.vmem [resolvable:$true] %s8_s14 }
   0x2   :  { %s937_s15 = scalar_lea.vmem %s9_s14, 32  ;;  %p942_p1 = scmp.lt.s32.totalorder %s9_s14, %s9_s14 }
   0x3   :  { %p938_p0 = scmp.ne.s32.totalorder %s9_s14, %s937_s15  ;;  %p943_p2 = scmp.lt.s32.totalorder %s937_s15, %s937_s15 }
   0x5   :  { %p944_p3 = por %p943_p2, %p942_p1 }
   0x7   :  { %p945_p4 = pnand %p944_p3, %p938_p0 }
   0x9   :  { %948 = shalt.err (!%p945_p4)  }
   0xa   :  { %s1045_s16 = smov [#allocation5]  }
   0xb   :  { %11 = dma.vmem_to_smem %s9_s14, 32, %s1045_s16, [#allocation4] }
   0xc   :  { %999 = dma.done.wait [#allocation4], 32 }
   0xd   :  { %1000 = vsyncadd [#allocation4], 4294967264 }
   0xe   :  { %13 = sfence }
   0xf   :  { %14 = vsyncpa [#allocation7], 0 }
  0x10   :  { %16 = vsyncpa [#allocation7 + $0x1], 0  ;;  %s1070_s17 = smov 0   ;;  %s1072_s18 = smov 0  }
  0x11   :  { %s1074_s0 = smov 0   ;;  %s1076_s19 = smov 0  }
  0x12   :  { %s1078_s20 = smov 0   ;;  %s1080_s21 = smov 0  }
  0x13 LB: > { %s855_s22 = sadd.s32 4294967295, %s1043_s21   ;;  %s856_s23 = sadd.s32 4294967294, %s1043_s21   ;;  %s1043_s21 = sphi %s1080_s21, %s22_s21   ;;  %s1039_s20 = sphi %s1078_s20, %s1220_s20   ;;  %s1035_s19 = sphi %s1076_s19, %s1219_s19   ;;  %s1031_s0 = sphi %s1074_s0, %s1218_s0   ;;  %s1027_s18 = sphi %s1072_s18, %s1217_s18   ;;  %s1023_s17 = sphi %s1070_s17, %s1216_s17  }
  0x14   : > { %s34_s24 = sadd.s32 1, %s1039_s20  ;;  %s69_s25 = sadd.s32 1, %s1031_s0 }
  0x15   : > { %p36_p5 = scmp.ge.s32.totalorder %s34_s24, 2  ;;  %p79_p6 = scmp.ne.s32.totalorder %s1031_s0, %s1027_s18 }
  0x16   : > { %p80_p7 = scmp.eq.s32.totalorder %s855_s22, 1  ;;  %p85_p8 = scmp.ne.s32.totalorder %s1027_s18, %s1023_s17 }
  0x17   : > { %s1222_s24 = smov (%p36_p5, %s34_s24), 0  ;;  %p86_p10 = scmp.eq.s32.totalorder %s856_s23, 1 }
  0x18   : > { %p1108_p9 = por %p80_p7, %p79_p6  ;;  %s66_s27 = ssub.s32 %s1039_s20, %s1222_s24 }
  0x19   : > { %p859_p11 = scmp.ge.s32.totalorder %s1043_s21, 1  ;;  %p67_p12 = scmp.eq.s32.totalorder %s66_s27, 0 }
  0x1a   : > { %p1115_p13 = por %p86_p10, %p85_p8  ;;  %p111_p0 = scmp.lt.s32.totalorder %s1043_s21, 3 }
  0x1b   : > { %s1121_s29 = scalar_select %p67_p12, %s1031_s0, %s69_s25  }
  0x1c   : > { %p112_p1 = pnand %p859_p11, %p111_p0 }
  0x1d   : > { %s127_s30 = sand.u32 (!%p112_p1), 1, %s1027_s18   ;;  %s1124_s4 = sshll.u32 (!%p112_p1), %s1035_s19, 7 }
  0x1e   : > { %115 = sbr.rel (%p112_p1) target bundleno = 149 (0x95), region = 24  ;;  %s1128_s5 = sshll.u32 (!%p112_p1), %s127_s30, 3 }
  0x1f   : > { %s143_s6 = sld [smem:[#allocation5 + %s1124_s4]] (!%p112_p1)  ;;  %s129_s10 = scalar_lea.vmem (!%p112_p1), [#allocation6], %s1128_s5 }
  0x25   : > { %s144_s9 = scalar_lea.vmem %s1211_s1, %s143_s6 }
  0x26   : > { %v163_v0 = vld [vmem:[%s144_s9] sm:$0x1] }
  0x27   : > { %164 = vst [vmem:[#allocation2] sm:$0x1] %v163_v0 }
  0x28   : > { %190 = vsyncadd [#allocation3], 16  ;;  %s198_s11 = sadd.s32 1, %s1124_s4 }
  0x29   : > { %s199_s12 = sld [smem:[#allocation5 + %s198_s11]] }
  0x2f   : > { %s200_s15 = scalar_lea.vmem %s1211_s1, %s199_s12 }
  0x30   : > { %v221_v1 = vld [vmem:[%s200_s15] sm:$0x1] }
  0x31   : > { %222 = vst [vmem:[#allocation2 + $0x1] sm:$0x1] %v221_v1 }
  0x32   : > { %248 = vsyncadd [#allocation3 + $0x1], 16  ;;  %s256_s16 = sadd.s32 2, %s1124_s4 }
  0x33   : > { %s257_s19 = sld [smem:[#allocation5 + %s256_s16]] }
  0x39   : > { %s258_s25 = scalar_lea.vmem %s1211_s1, %s257_s19 }
  0x3a   : > { %v279_v2 = vld [vmem:[%s258_s25] sm:$0x1] }
  0x3b   : > { %280 = vst [vmem:[#allocation2 + $0x2] sm:$0x1] %v279_v2 }
  0x3c   : > { %306 = vsyncadd [#allocation3 + $0x2], 16  ;;  %s314_s27 = sadd.s32 3, %s1124_s4 }
  0x3d   : > { %s315_s6 = sld [smem:[#allocation5 + %s314_s27]] }
  0x43   : > { %s316_s9 = scalar_lea.vmem %s1211_s1, %s315_s6 }
  0x44   : > { %v337_v3 = vld [vmem:[%s316_s9] sm:$0x1] }
  0x45   : > { %338 = vst [vmem:[#allocation2 + $0x3] sm:$0x1] %v337_v3 }
  0x46   : > { %364 = vsyncadd [#allocation3 + $0x3], 16  ;;  %s372_s11 = sadd.s32 4, %s1124_s4 }
  0x47   : > { %s373_s12 = sld [smem:[#allocation5 + %s372_s11]] }
  0x4d   : > { %s374_s15 = scalar_lea.vmem %s1211_s1, %s373_s12 }
  0x4e   : > { %v395_v4 = vld [vmem:[%s374_s15] sm:$0x1] }
  0x4f   : > { %396 = vst [vmem:[#allocation2 + $0x4] sm:$0x1] %v395_v4 }
  0x50   : > { %422 = vsyncadd [#allocation3 + $0x4], 16  ;;  %s430_s16 = sadd.s32 5, %s1124_s4 }
  0x51   : > { %s431_s19 = sld [smem:[#allocation5 + %s430_s16]] }
  0x57   : > { %s432_s25 = scalar_lea.vmem %s1211_s1, %s431_s19 }
  0x58   : > { %v453_v5 = vld [vmem:[%s432_s25] sm:$0x1] }
  0x59   : > { %454 = vst [vmem:[#allocation2 + $0x5] sm:$0x1] %v453_v5 }
  0x5a   : > { %480 = vsyncadd [#allocation3 + $0x5], 16  ;;  %s488_s27 = sadd.s32 6, %s1124_s4 }
  0x5b   : > { %s489_s6 = sld [smem:[#allocation5 + %s488_s27]] }
  0x61   : > { %s490_s9 = scalar_lea.vmem %s1211_s1, %s489_s6 }
  0x62   : > { %v511_v6 = vld [vmem:[%s490_s9] sm:$0x1] }
  0x63   : > { %512 = vst [vmem:[#allocation2 + $0x6] sm:$0x1] %v511_v6 }
  0x64   : > { %538 = vsyncadd [#allocation3 + $0x6], 16  ;;  %s546_s11 = sadd.s32 7, %s1124_s4 }
  0x65   : > { %s547_s12 = sld [smem:[#allocation5 + %s546_s11]] }
  0x6b   : > { %s548_s15 = scalar_lea.vmem %s1211_s1, %s547_s12 }
  0x6c   : > { %v569_v7 = vld [vmem:[%s548_s15] sm:$0x1] }
  0x6d   : > { %570 = vst [vmem:[#allocation2 + $0x7] sm:$0x1] %v569_v7 }
  0x6e   : > { %596 = vsyncadd [#allocation3 + $0x7], 16 }
  0x6f   : > { %1001 = dma.done.wait [#allocation3], 16 }
  0x70   : > { %1002 = vsyncadd [#allocation3], 4294967280 }
  0x71   : > { %1003 = dma.done.wait [#allocation3 + $0x1], 16 }
  0x72   : > { %1004 = vsyncadd [#allocation3 + $0x1], 4294967280 }
  0x73   : > { %1005 = dma.done.wait [#allocation3 + $0x2], 16 }
  0x74   : > { %1006 = vsyncadd [#allocation3 + $0x2], 4294967280 }
  0x75   : > { %1007 = dma.done.wait [#allocation3 + $0x3], 16 }
  0x76   : > { %1008 = vsyncadd [#allocation3 + $0x3], 4294967280 }
  0x77   : > { %1009 = dma.done.wait [#allocation3 + $0x4], 16 }
  0x78   : > { %1010 = vsyncadd [#allocation3 + $0x4], 4294967280 }
  0x79   : > { %1011 = dma.done.wait [#allocation3 + $0x5], 16 }
  0x7a   : > { %1012 = vsyncadd [#allocation3 + $0x5], 4294967280 }
  0x7b   : > { %1013 = dma.done.wait [#allocation3 + $0x6], 16 }
  0x7c   : > { %1014 = vsyncadd [#allocation3 + $0x6], 4294967280 }
  0x7d   : > { %1015 = dma.done.wait [#allocation3 + $0x7], 16 }
  0x7e   : > { %1016 = vsyncadd [#allocation3 + $0x7], 4294967280  ;;  %s634_s16 = sshll.u32 %s129_s10, 4  ;;  %v614_v8 = vld [vmem:[#allocation2] sm:$0xff]  ;;  %vm617_vm0 = vcmask 261120   ;;  %s632_s27 = scalar_lea.hbm %s1213_s3, %s1124_s4  ;;  %s635_s16 = int_to_ptr.vmem [resolvable:$true] %s634_s16 }
  0x7f   : > { %v615_v9 = vld [vmem:[%s1212_s2] sm:$0xff]  ;;  %s620_s6 = scalar_lea.sflag [#allocation7], %s127_s30  ;;  %s949_s7 = scalar_lea.vmem %s635_s16, 128 }
  0x80   : > { %v616_v10 = vadd.f32 %v615_v9, %v614_v8  ;;  %p950_p2 = scmp.ne.s32.totalorder %s635_s16, %s949_s7  ;;  %s1046_s8 = smov [#allocation6]  }
  0x81   : > { %s953_s9 = sshll.u32 %s1046_s8, 4  ;;  %s954_s9 = int_to_ptr.vmem [resolvable:$false] %s953_s9 }
  0x82   : > { %618 = vst.msk [vmem:[%s129_s10] sm:$0xff] %vm617_vm0, %v616_v10  ;;  %p951_p3 = pnand %p950_p2, %p1108_p9  ;;  %s955_s11 = scalar_lea.vmem %s954_s9, 256 }
  0x83   : > { %p956_p5 = scmp.lt.s32.totalorder %s635_s16, %s954_s9  ;;  %p957_p6 = scmp.lt.s32.totalorder %s955_s11, %s949_s7 }
  0x84   : > { %p952_p4 = pneg %p951_p3 }
  0x85   : > { %p958_p7 = por %p957_p6, %p956_p5 }
  0x87   : > { %p959_p8 = pnand %p958_p7, %p952_p4 }
  0x89   : > { %962 = shalt.err (!%p959_p8)
}
  0x8a   : > { %s963_s4 = scalar_lea.hbm %s632_s27, 128  ;;  %s967_s10 = scalar_lea.hbm %s1213_s3, 256 }
  0x8b   : > { %p964_p10 = scmp.ne.s32.totalorder %s632_s27, %s963_s4  ;;  %p968_p0 = scmp.lt.s32.totalorder %s632_s27, %s1213_s3 }
  0x8c   : > { %p969_p1 = scmp.lt.s32.totalorder %s967_s10, %s963_s4 }
  0x8d   : > { %p965_p11 = pnand %p964_p10, %p1108_p9 }
  0x8e   : > { %p970_p2 = por %p969_p1, %p968_p0 }
  0x8f   : > { %p966_p12 = pneg %p965_p11 }
  0x91   : > { %p971_p3 = pnand %p970_p2, %p966_p12 }
  0x93   : > { %974 = shalt.err (!%p971_p3)
}
  0x94   : > { %881 = dma.vmem_to_hbm [thread:$0]  (%p1108_p9), %s635_s16, 128, %s632_s27, %s620_s6  }
  0x95 PF: > { %p887_p4 = scmp.ge.s32.totalorder %s1043_s21, 2  ;;  %s646_s14 = sand.u32 1, %s1023_s17  }
  0x96   : > { %s647_s15 = scalar_lea.sflag [#allocation7], %s646_s14 }
  0x97   : > { %p884_p5 = pnand %p887_p4, %p1115_p13 }
  0x99   : > { %p885_p6 = pneg %p884_p5 }
  0x9b   : > { %1018 = dma.done.wait (%p885_p6), %s647_s15, 128  }
  0x9c   : > { %1020 = vsyncadd (%p885_p6), %s647_s15, 4294967168  ;;  %s22_s21 = sadd.s32 1, %s1043_s21   ;;  %s1216_s17 = smov %s1027_s18 }
  0x9d   : > { %p19_p7 = scmp.ge.s32.totalorder %s22_s21, 4   ;;  %s1217_s18 = smov %s1031_s0 }
  0x9e   : > { %s1218_s0 = smov %s1121_s29  ;;  %s1219_s19 = smov %s1039_s20 }
  0x9f   : > { %s1220_s20 = smov %s1222_s24  ;;  %21 = sbr.rel (!%p19_p7) target bundleno = 19 (0x13), region = 408 }
  0xa4   :  { %652 = vsyncpa [#allocation7], 1 }
  0xa5   :  { %654 = vsyncpa [#allocation7 + $0x1], 1 }
  0xa6   :  { %655 = vsyncmov [#allocation3] }
  0xa9   :  { %s656_s26 = vpop.sfrf %655 }
  0xaa   :  { %p873_p9 = scmp.ne.s32.totalorder %s656_s26, 0 }
  0xac   :  { %660 = shalt.err (%p873_p9)  }
  0xad   :  { %662 = vsyncmov [#allocation3 + $0x1] }
  0xb0   :  { %s663_s28 = vpop.sfrf %662 }
  0xb1   :  { %p874_p13 = scmp.ne.s32.totalorder %s663_s28, 0 }
  0xb3   :  { %667 = shalt.err (%p874_p13)  }
  0xb4   :  { %669 = vsyncmov [#allocation3 + $0x2] }
  0xb7   :  { %s670_s16 = vpop.sfrf %669 }
  0xb8   :  { %p875_p8 = scmp.ne.s32.totalorder %s670_s16, 0 }
  0xba   :  { %674 = shalt.err (%p875_p8)  }
  0xbb   :  { %676 = vsyncmov [#allocation3 + $0x3] }
  0xbe   :  { %s677_s29 = vpop.sfrf %676 }
  0xbf   :  { %p876_p10 = scmp.ne.s32.totalorder %s677_s29, 0 }
  0xc1   :  { %681 = shalt.err (%p876_p10)  }
  0xc2   :  { %683 = vsyncmov [#allocation3 + $0x4] }
  0xc5   :  { %s684_s21 = vpop.sfrf %683 }
  0xc6   :  { %p877_p11 = scmp.ne.s32.totalorder %s684_s21, 0 }
  0xc8   :  { %688 = shalt.err (%p877_p11)  }
  0xc9   :  { %690 = vsyncmov [#allocation3 + $0x5] }
  0xcc   :  { %s691_s1 = vpop.sfrf %690 }
  0xcd   :  { %p878_p12 = scmp.ne.s32.totalorder %s691_s1, 0 }
  0xcf   :  { %695 = shalt.err (%p878_p12)  }
  0xd0   :  { %697 = vsyncmov [#allocation3 + $0x6] }
  0xd3   :  { %s698_s2 = vpop.sfrf %697 }
  0xd4   :  { %p879_p0 = scmp.ne.s32.totalorder %s698_s2, 0 }
  0xd6   :  { %702 = shalt.err (%p879_p0)  }
  0xd7   :  { %704 = vsyncmov [#allocation3 + $0x7] }
  0xda   :  { %s705_s3 = vpop.sfrf %704 }
  0xdb   :  { %p880_p1 = scmp.ne.s32.totalorder %s705_s3, 0 }
  0xdd   :  { %709 = shalt.err (%p880_p1)  }

</bundles_post_ra>
